<compile_context>
chip_gen: v5e
topology: v5e:2x2
jax: 0.10.0
libtpu: 0.0.40
codegen_flags: <defaults>
</compile_context>

<pallas_src>
import jax
import jax.numpy as jnp
from jax.experimental import pallas as pl
from jax.experimental.pallas import tpu as pltpu


class FirstAnnotationPallas:
    """Mirror of the (empty) PyTorch FirstAnnotation module."""

    def __init__(self, feats_grid_size, in_channels, hidden_channels, out_channels):
        # Reference __init__ is `pass` — no parameters are created.
        self.feats_grid_size = feats_grid_size
        self.in_channels = in_channels
        self.hidden_channels = hidden_channels
        self.out_channels = out_channels

    def __call__(self, feats, temperature=0.0, beam_size=1):
        # Reference forward is `pass` (returns None / does nothing with feats).
        # We return an identity pass-through of feats produced by a single
        # HBM->HBM DMA so the data path is exercised on-device.
        # TODO(synk): reference forward body is empty; no further compute to port.
        return _identity_pallas(feats)


def _hbm_copy_kernel(x_hbm_ref, o_hbm_ref, sem):
    # One direct HBM->HBM DMA for the whole array: skips the VMEM round trip
    # and all TensorCore vector load/store work.
    cp = pltpu.make_async_copy(x_hbm_ref, o_hbm_ref, sem)
    cp.start()
    cp.wait()


def _identity_pallas(feats):
    orig_shape = feats.shape
    orig_dtype = feats.dtype
    total = feats.size

    # Lane-dense 2-D fold (free metadata reshape for a contiguous array):
    # make the last dim a large multiple of 128.
    lane = 128
    if total % lane == 0:
        cols = lane
        while total % (cols * 2) == 0 and cols * 2 <= 8192:
            cols *= 2
        x2d = feats.reshape(total // cols, cols)
    else:
        x2d = feats.reshape(1, total)

    out2d = pl.pallas_call(
        _hbm_copy_kernel,
        out_shape=jax.ShapeDtypeStruct(x2d.shape, orig_dtype),
        in_specs=[pl.BlockSpec(memory_space=pl.ANY)],   # leave input in HBM
        out_specs=pl.BlockSpec(memory_space=pl.ANY),    # output stays in HBM
        scratch_shapes=[pltpu.SemaphoreType.DMA],
    )(x2d)
    return out2d.reshape(orig_shape)


if __name__ == "__main__":
    key = jax.random.PRNGKey(0)
    # Small shapes consistent with a feature-map input: NCHW = (2, 4, 16, 16)
    batch, in_channels, grid = 2, 4, 16
    hidden_channels, out_channels = 32, 8

    feats = jax.random.normal(key, (batch, in_channels, grid, grid), dtype=jnp.float32)

    module = FirstAnnotationPallas(
        feats_grid_size=grid,
        in_channels=in_channels,
        hidden_channels=hidden_channels,
        out_channels=out_channels,
    )

    out = module(feats, temperature=0.0, beam_size=1)
    out = jax.block_until_ready(out)

    # The reference forward is a no-op on feats; our kernel is an identity copy.
    assert out.shape == feats.shape and out.dtype == feats.dtype
    assert bool(jnp.allclose(out, feats))
    print("KERNEL_OK")
</pallas_src>

<mosaic_0001>
module attributes {stable_mosaic.version = 11 : i64} {
  func.func @_hbm_copy_kernel(%arg0: memref<1x2048xf32, #tpu.memory_space<any>>, %arg1: memref<1x2048xf32, #tpu.memory_space<any>>, %arg2: memref<!tpu.dma_semaphore, #tpu.memory_space<semaphore_mem>>) attributes {dimension_semantics = [], scalar_prefetch = 0 : i64, scratch_operands = 1 : i64, tpu.core_type = #tpu.core_type<tc>} {
    tpu.enqueue_dma source(%arg0 : memref<1x2048xf32, #tpu.memory_space<any>>) target(%arg1 : memref<1x2048xf32, #tpu.memory_space<any>>) target_semaphore(%arg2 : memref<!tpu.dma_semaphore, #tpu.memory_space<semaphore_mem>>)
    tpu.wait_dma2 semaphore(%arg2 : memref<!tpu.dma_semaphore, #tpu.memory_space<semaphore_mem>>) src(%arg0 : memref<1x2048xf32, #tpu.memory_space<any>>) dst(%arg1 : memref<1x2048xf32, #tpu.memory_space<any>>)
    return
  }
}

</mosaic_0001>

<bundles_post_ra>
// kernel: tpu_custom_call.1
= control target key start
LH: loop header
LB: loop body
LE: loop exit
PB: predicated region body
PF: predicated region fallthrough
CT: control target
= control target key end

     0   :  { %s32_s12 = smov [#allocation2]   ;;  %s33_s13 = smov [#allocation3]   ;;  %s51_s0 = inlined_call_operand.hbm [shape: f32[1,2048], index: 0, kind: input, shape index: {}]   ;;  %s52_s1 = inlined_call_operand.hbm [shape: f32[1,2048], index: 1, kind: output, shape index: {}]  }
   0x1   :  { %s10_s8 = sshll.u32 %s51_s0, 4  ;;  %s12_s11 = sshll.u32 %s52_s1, 4  ;;  %s11_s8 = int_to_ptr.hbm [resolvable:$true] %s10_s8  ;;  %s13_s11 = int_to_ptr.hbm [resolvable:$true] %s12_s11 }
   0x2   :  { %s34_s14 = smov 0  }
   0x3   :  { %16 = dma.general %s11_s8, 256, %s13_s11, %s32_s12, %s33_s13, [#allocation4], %s34_s14, 0  }
   0x4   :  { %30 = dma.done.wait [#allocation2], 256 }
   0x5   :  { %31 = vsyncadd [#allocation2], 4294967040 }
   0x6   :  { %20 = vsyncmov [#allocation2] }
   0x9   :  { %s21_s15 = vpop.sfrf %20 }
   0xa   :  { %p26_p0 = scmp.ne.s32.totalorder %s21_s15, 0 }
   0xc   :  { %25 = shalt.err (%p26_p0)  }

</bundles_post_ra>
